<compile_context>
chip_gen: v7x
topology: tpu7x:2x2x1
jax: 0.10.0
libtpu: 0.0.40
codegen_flags: <defaults>
</compile_context>

<pallas_src>
import math

import jax
import jax.numpy as jnp
from jax.experimental import pallas as pl
from jax.experimental.pallas import tpu as pltpu


def _round_up(x, m):
    return ((x + m - 1) // m) * m


def actor_kernel(x_ref, w1a_ref, w2ha_ref, out_ref):
    """x: [B, S]; w1a: [S+1, H] (last row = b1);
    w2ha: [H+1, H+P] (rows 0:H = [w2 | head_w], row H = [b2 | head_b])."""
    B, S = x_ref.shape
    H = w1a_ref.shape[1]
    P = w2ha_ref.shape[1] - H

    x = x_ref[...]                          # [B, S]

    b1 = w1a_ref[S:S + 1, :]                # [1, H]   (bias row of w1a)
    b2 = w2ha_ref[H:H + 1, 0:H]             # [1, H]   (bias row of w2ha)
    bh = w2ha_ref[H:H + 1, H:H + P]         # [1, P]

    # --- fc1 + ReLU --------------------------------------------------------
    if S <= 8:
        # Tiny K (3 for Pendulum): S broadcast-FMAs on the VPU, avoiding an
        # MXU push/drain for a K=3 contraction.
        h1 = b1 + x[:, 0:1] * w1a_ref[0:1, :]
        for i in range(1, S):
            h1 = h1 + x[:, i:i + 1] * w1a_ref[i:i + 1, :]
    else:
        h1 = jnp.dot(x, w1a_ref[0:S, :],
                     preferred_element_type=jnp.float32) + b1
    h1 = jnp.maximum(h1, 0.0)               # [B, H]

    # --- fc2 + ReLU --------------------------------------------------------
    h2 = jnp.dot(h1, w2ha_ref[0:H, 0:H], preferred_element_type=jnp.float32)
    h2 = jnp.maximum(h2 + b2, 0.0)          # [B, H]

    # --- fused mean/log_std head: one matmul, one lane-dense store ----------
    out = jnp.dot(h2, w2ha_ref[0:H, H:H + P],
                  preferred_element_type=jnp.float32)
    out_ref[...] = out + bh                 # [B, P]  (lanes [0:2A] are real)


def pack_actor_params(w1, b1, w2, b2, wm, bm, ws, bs):
    """Pack the 8 per-layer tensors into 2 weight arrays (3 kernel inputs
    incl. state):

      w1a  = [S+1, H]     : w1 with b1 appended as the last row
      w2ha = [H+1, H+P]   : rows 0:H = [w2 | zero-padded (wm|ws)],
                            row H    = [b2 | zero-padded (bm|bs)]

    P = 2*action_dim rounded up to a multiple of 128 so the kernel's single
    output tile is lane-dense (unmasked stores). Returns (w1a, w2ha, A).
    """
    S, H = w1.shape
    A = wm.shape[1]
    P = _round_up(2 * A, 128)

    w1a = jnp.concatenate([w1, b1.reshape(1, H)], axis=0)          # [S+1, H]

    wh = jnp.zeros((H, P), jnp.float32)
    wh = wh.at[:, 0:A].set(wm).at[:, A:2 * A].set(ws)
    top = jnp.concatenate([w2, wh], axis=1)                        # [H, H+P]

    bh = jnp.zeros((1, P), jnp.float32)
    bh = bh.at[:, 0:A].set(bm.reshape(1, A)).at[:, A:2 * A].set(bs.reshape(1, A))
    bias_row = jnp.concatenate([b2.reshape(1, H), bh], axis=1)     # [1, H+P]

    w2ha = jnp.concatenate([top, bias_row], axis=0)                # [H+1, H+P]
    return w1a, w2ha, A


def actor_forward_packed(state, w1a, w2ha, *, block_b=512):
    """state: [B, S] f32 -> packed [B, P] output (mean in lanes [0:A],
    log_std in lanes [A:2A], padding zeros beyond). No post-kernel ops."""
    B, S = state.shape
    H = w1a.shape[1]
    P = w2ha.shape[1] - H

    cost = pl.CostEstimate(
        flops=2 * B * H * (S + H + P),
        transcendentals=0,
        bytes_accessed=4 * (B * S + (S + 1) * H + (H + 1) * (H + P) + B * P),
    )

    kwargs = dict(
        out_shape=jax.ShapeDtypeStruct((B, P), jnp.float32),
        cost_estimate=cost,
    )

    if B > block_b and B % block_b == 0:
        # Batch-parallel grid: megacore sharding on v7x, bounded per-block
        # VMEM for very large vectorized-env batches.
        kwargs["grid_spec"] = pltpu.PrefetchScalarGridSpec(
            num_scalar_prefetch=0,
            grid=(B // block_b,),
            in_specs=[
                pl.BlockSpec((block_b, S), lambda i: (i, 0)),
                pl.BlockSpec(w1a.shape, lambda i: (0, 0)),
                pl.BlockSpec(w2ha.shape, lambda i: (0, 0)),
            ],
            out_specs=pl.BlockSpec((block_b, P), lambda i: (i, 0)),
        )
        kwargs["compiler_params"] = pltpu.CompilerParams(
            dimension_semantics=("parallel",))
    else:
        # Single-shot: whole problem in one kernel invocation (B=8 path).
        kwargs["grid_spec"] = pltpu.PrefetchScalarGridSpec(
            num_scalar_prefetch=0,
            grid=(),
            in_specs=[
                pl.BlockSpec(state.shape, lambda: (0, 0)),
                pl.BlockSpec(w1a.shape, lambda: (0, 0)),
                pl.BlockSpec(w2ha.shape, lambda: (0, 0)),
            ],
            out_specs=pl.BlockSpec((B, P), lambda: (0, 0)),
        )

    return pl.pallas_call(actor_kernel, **kwargs)(state, w1a, w2ha)


def actor_forward(state, w1a, w2ha, action_dim, *, block_b=512):
    """PyTorch-compatible API: returns (mean [B, A], log_std [B, A]).
    On a hot path prefer actor_forward_packed (no post-kernel slices)."""
    out = actor_forward_packed(state, w1a, w2ha, block_b=block_b)
    packed = out[:, 0:2 * action_dim]       # one contiguous slice
    return packed[:, 0:action_dim], packed[:, action_dim:]


def init_actor_params(key, state_dim, action_dim, hidden_size=128):
    """Deterministic init mimicking PyTorch nn.Linear default:
    U(-1/sqrt(fan_in), 1/sqrt(fan_in)) for both weight and bias."""
    def linear(k, fan_in, fan_out):
        kw, kb = jax.random.split(k)
        bound = 1.0 / math.sqrt(fan_in)
        # Stored as [in, out] (transposed vs. PyTorch) for x @ W convention.
        w = jax.random.uniform(kw, (fan_in, fan_out), jnp.float32, -bound, bound)
        b = jax.random.uniform(kb, (1, fan_out), jnp.float32, -bound, bound)
        return w, b

    k1, k2, k3, k4 = jax.random.split(key, 4)
    w1, b1 = linear(k1, state_dim, hidden_size)
    w2, b2 = linear(k2, hidden_size, hidden_size)
    wm, bm = linear(k3, hidden_size, action_dim)
    ws, bs = linear(k4, hidden_size, action_dim)
    return (w1, b1, w2, b2, wm, bm, ws, bs)


if __name__ == "__main__":
    # Pendulum-v1: observation dim = 3, action dim = 1.
    state_dim, action_dim, hidden_size = 3, 1, 128

    key = jax.random.PRNGKey(0)
    k_params, k_state = jax.random.split(key)

    raw = init_actor_params(k_params, state_dim, action_dim, hidden_size)
    w1, b1, w2, b2, wm, bm, ws, bs = raw
    w1a, w2ha, A = pack_actor_params(*raw)

    def ref_forward(s):
        h1 = jnp.maximum(s @ w1 + b1, 0.0)
        h2 = jnp.maximum(h1 @ w2 + b2, 0.0)
        return h2 @ wm + bm, h2 @ ws + bs

    # --- small single-shot path (grid=()) ----------------------------------
    batch = 8
    state = jax.random.normal(k_state, (batch, state_dim), jnp.float32)

    mean, log_std = jax.block_until_ready(actor_forward(state, w1a, w2ha, A))
    ref_mean, ref_log_std = ref_forward(state)

    assert mean.shape == (batch, action_dim)
    assert log_std.shape == (batch, action_dim)
    assert jnp.allclose(mean, ref_mean, atol=1e-5)
    assert jnp.allclose(log_std, ref_log_std, atol=1e-5)

    # --- batch-parallel grid path (v7x megacore relevant regime) ------------
    big_b = 1024
    big_state = jax.random.normal(jax.random.PRNGKey(1), (big_b, state_dim),
                                  jnp.float32)
    big_packed = jax.block_until_ready(
        actor_forward_packed(big_state, w1a, w2ha, block_b=512))
    rm2, rs2 = ref_forward(big_state)
    assert jnp.allclose(big_packed[:, 0:A], rm2, atol=1e-5)
    assert jnp.allclose(big_packed[:, A:2 * A], rs2, atol=1e-5)

    print("KERNEL_OK")
</pallas_src>

<mosaic_0001>
module attributes {stable_mosaic.version = 11 : i64} {
  func.func @actor_kernel(%arg0: memref<8x3xf32, #tpu.memory_space<vmem>>, %arg1: memref<4x128xf32, #tpu.memory_space<vmem>>, %arg2: memref<129x256xf32, #tpu.memory_space<vmem>>, %arg3: memref<8x128xf32, #tpu.memory_space<vmem>>) attributes {dimension_semantics = [], scalar_prefetch = 0 : i64, scratch_operands = 0 : i64, tpu.core_type = #tpu.core_type<tc>} {
    %c0 = arith.constant 0 : index
    %c0_0 = arith.constant 0 : index
    %0 = vector.load %arg0[%c0, %c0_0] : memref<8x3xf32, #tpu.memory_space<vmem>>, vector<8x3xf32>
    %c3 = arith.constant 3 : index
    %c0_1 = arith.constant 0 : index
    %1 = vector.load %arg1[%c3, %c0_1] : memref<4x128xf32, #tpu.memory_space<vmem>>, vector<1x128xf32>
    %c128 = arith.constant 128 : index
    %c0_2 = arith.constant 0 : index
    %2 = vector.load %arg2[%c128, %c0_2] : memref<129x256xf32, #tpu.memory_space<vmem>>, vector<1x128xf32>
    %c128_3 = arith.constant 128 : index
    %c128_4 = arith.constant 128 : index
    %3 = vector.load %arg2[%c128_3, %c128_4] : memref<129x256xf32, #tpu.memory_space<vmem>>, vector<1x128xf32>
    %4 = vector.extract_strided_slice %0 {offsets = [0, 0], sizes = [8, 1], strides = [1, 1]} : vector<8x3xf32> to vector<8x1xf32>
    %c0_5 = arith.constant 0 : index
    %c0_6 = arith.constant 0 : index
    %5 = vector.load %arg1[%c0_5, %c0_6] : memref<4x128xf32, #tpu.memory_space<vmem>>, vector<1x128xf32>
    %6 = vector.broadcast %4 : vector<8x1xf32> to vector<8x128xf32>
    %7 = vector.broadcast %5 : vector<1x128xf32> to vector<8x128xf32>
    %8 = arith.mulf %6, %7 : vector<8x128xf32>
    %9 = vector.broadcast %1 : vector<1x128xf32> to vector<8x128xf32>
    %10 = arith.addf %9, %8 : vector<8x128xf32>
    %11 = vector.extract_strided_slice %0 {offsets = [0, 1], sizes = [8, 1], strides = [1, 1]} : vector<8x3xf32> to vector<8x1xf32>
    %c1 = arith.constant 1 : index
    %c0_7 = arith.constant 0 : index
    %12 = vector.load %arg1[%c1, %c0_7] : memref<4x128xf32, #tpu.memory_space<vmem>>, vector<1x128xf32>
    %13 = vector.broadcast %11 : vector<8x1xf32> to vector<8x128xf32>
    %14 = vector.broadcast %12 : vector<1x128xf32> to vector<8x128xf32>
    %15 = arith.mulf %13, %14 : vector<8x128xf32>
    %16 = arith.addf %10, %15 : vector<8x128xf32>
    %17 = vector.extract_strided_slice %0 {offsets = [0, 2], sizes = [8, 1], strides = [1, 1]} : vector<8x3xf32> to vector<8x1xf32>
    %c2 = arith.constant 2 : index
    %c0_8 = arith.constant 0 : index
    %18 = vector.load %arg1[%c2, %c0_8] : memref<4x128xf32, #tpu.memory_space<vmem>>, vector<1x128xf32>
    %19 = vector.broadcast %17 : vector<8x1xf32> to vector<8x128xf32>
    %20 = vector.broadcast %18 : vector<1x128xf32> to vector<8x128xf32>
    %21 = arith.mulf %19, %20 : vector<8x128xf32>
    %22 = arith.addf %16, %21 : vector<8x128xf32>
    %cst = arith.constant 0.000000e+00 : f32
    %23 = vector.broadcast %cst : f32 to vector<8x128xf32>
    %24 = arith.maximumf %22, %23 : vector<8x128xf32>
    %c0_9 = arith.constant 0 : index
    %c0_10 = arith.constant 0 : index
    %25 = vector.load %arg2[%c0_9, %c0_10] : memref<129x256xf32, #tpu.memory_space<vmem>>, vector<128x128xf32>
    %cst_11 = arith.constant dense<0.000000e+00> : vector<8x128xf32>
    %26 = tpu.matmul %24, %25, %cst_11 {dimension_numbers = #tpu.dot_dimension_numbers<[1], [0], [0], [1], [0, 0, 1, 1], [], []>} : vector<8x128xf32>, vector<128x128xf32>, vector<8x128xf32> -> vector<8x128xf32>
    %27 = vector.broadcast %2 : vector<1x128xf32> to vector<8x128xf32>
    %28 = arith.addf %26, %27 : vector<8x128xf32>
    %cst_12 = arith.constant 0.000000e+00 : f32
    %29 = vector.broadcast %cst_12 : f32 to vector<8x128xf32>
    %30 = arith.maximumf %28, %29 : vector<8x128xf32>
    %c0_13 = arith.constant 0 : index
    %c128_14 = arith.constant 128 : index
    %31 = vector.load %arg2[%c0_13, %c128_14] : memref<129x256xf32, #tpu.memory_space<vmem>>, vector<128x128xf32>
    %cst_15 = arith.constant dense<0.000000e+00> : vector<8x128xf32>
    %32 = tpu.matmul %30, %31, %cst_15 {dimension_numbers = #tpu.dot_dimension_numbers<[1], [0], [0], [1], [0, 0, 1, 1], [], []>} : vector<8x128xf32>, vector<128x128xf32>, vector<8x128xf32> -> vector<8x128xf32>
    %33 = vector.broadcast %3 : vector<1x128xf32> to vector<8x128xf32>
    %34 = arith.addf %32, %33 : vector<8x128xf32>
    %c0_16 = arith.constant 0 : index
    %c0_17 = arith.constant 0 : index
    %35 = vector.load %arg3[%c0_16, %c0_17] : memref<8x128xf32, #tpu.memory_space<vmem>>, vector<8x128xf32>
    tpu.vector_store %arg3[%c0_16, %c0_17], %34 {strides = array<i32>} : memref<8x128xf32, #tpu.memory_space<vmem>>, vector<8x128xf32>,
    return
  }
}

</mosaic_0001>

<bundles_post_ra>
// kernel: tpu_custom_call.1
= control target key start
LH: loop header
LB: loop body
LE: loop exit
PB: predicated region body
PF: predicated region fallthrough
CT: control target
= control target key end

     0   :  { %8 = vsyncpa [#allocation3], 0  ;;  %s564_s0 = inlined_call_operand.vmem [shape: f32[8,3], index: 0, kind: input, shape index: {}]   ;;  %s565_s1 = inlined_call_operand.vmem [shape: f32[4,128], index: 1, kind: input, shape index: {}]   ;;  %s566_s2 = inlined_call_operand.hbm [shape: f32[129,256], index: 2, kind: input, shape index: {}]   ;;  %s567_s3 = inlined_call_operand.hbm [shape: f32[8,128], index: 3, kind: output, shape index: {}]  }
   0x1   :  { %9 = vsyncpa [#allocation4], 0  ;;  %s479_s12 = smov [#allocation2]   ;;  %s431_s16 = scalar_lea.hbm %s566_s2, 4352 }
   0x2   :  { %s19_s13 = sshll.u32 %s479_s12, 4  ;;  %p432_p0 = scmp.ne.s32.totalorder %s566_s2, %s431_s16  ;;  %s20_s13 = int_to_ptr.vmem [resolvable:$true] %s19_s13 }
   0x3   :  { %p435_p1 = scmp.lt.u32.totalorder %s431_s16, %s566_s2 }
   0x5   :  { %p437_p2 = pnand %p435_p1, %p432_p0 }
   0x7   :  { %440 = shalt.err (!%p437_p2)
}
   0x8   :  { %s441_s21 = scalar_lea.vmem %s20_s13, 4352  ;;  %p446_p4 = scmp.lt.s32.totalorder %s20_s13, %s20_s13 }
   0x9   :  { %p442_p3 = scmp.ne.s32.totalorder %s20_s13, %s441_s21  ;;  %p447_p5 = scmp.lt.s32.totalorder %s441_s21, %s441_s21 }
   0xb   :  { %p448_p6 = por %p447_p5, %p446_p4 }
   0xd   :  { %p449_p7 = pnand %p448_p6, %p442_p3 }
   0xf   :  { %452 = shalt.err (!%p449_p7)
}
  0x10   :  { %s480_s22 = smov 256   ;;  %s481_s23 = smov 16  }
  0x11   :  { %25 = dma.hbm_to_vmem [thread:$0]  %s566_s2, 4352, %s20_s13, [#allocation3], %s480_s22, %s480_s22, %s481_s23  }
  0x12   :  { %475 = dma.done.wait [#allocation3], 4352  }
  0x13   :  { %476 = vsyncadd [#allocation3], 4294962944  ;;  %v482_v0 = vmov 0   ;;  %v483_v1 = vmov 2   ;;  %v484_v2 = vmov 0.0|0.0   ;;  %v29_v3 = vld [vmem:[%s564_s0] sm:$0xff] }
  0x14   :  { %427 = vset.pattern.permute.xlu0 %v482_v0  ;;  %429 = vset.pattern.permute.xlu1 %v483_v1  ;;  %v72_v4 = vld [vmem:[#allocation2] sm:$0xff]  ;;  %v73_v5 = vld [vmem:[#allocation2 + $0x10] sm:$0xff]  ;;  %v485_v12 = vmov 1   ;;  %vm486_vm0 = vmmov 0   ;;  %v487_v19 = vmov 0.0   ;;  %v159_v20 = vld [vmem:[#allocation2 + $0x8] sm:$0xff] }
  0x15   :  { %369 = vmatprep.subr.bf16.mxu0 %v484_v2  ;;  %393 = vmatprep.subr.bf16.mxu1 %v484_v2  ;;  %v370_v6 = vpack.c.bf16 %v73_v5, %v72_v4  ;;  %v74_v7 = vld [vmem:[#allocation2 + $0x20] sm:$0xff]  ;;  %v75_v8 = vld [vmem:[#allocation2 + $0x30] sm:$0xff]  ;;  %v160_v21 = vld [vmem:[#allocation2 + $0x18] sm:$0xff] }
  0x16   :  { %36 = vperm.xlu0 %427, %v29_v3   ;;  %62 = vperm.xlu1 %429, %v29_v3   ;;  %v373_v9 = vpack.c.bf16 %v75_v8, %v74_v7  ;;  %v76_v10 = vld [vmem:[#allocation2 + $0x40] sm:$0xff]  ;;  %v77_v11 = vld [vmem:[#allocation2 + $0x50] sm:$0xff]  ;;  %v161_v22 = vld [vmem:[#allocation2 + $0x28] sm:$0xff]  ;;  %v394_v24 = vpack.c.bf16 %v160_v21, %v159_v20 }
  0x17   :  { %371 = vmatpush3.bf16.msra.mxu0 %v370_v6  ;;  %v376_v13 = vpack.c.bf16 %v77_v11, %v76_v10  ;;  %v78_v14 = vld [vmem:[#allocation2 + $0x60] sm:$0xff]  ;;  %v79_v15 = vld [vmem:[#allocation2 + $0x70] sm:$0xff]  ;;  %331 = vmatprep.mubr.msk.f32.mxu0 %vm486_vm0, %v487_v19  ;;  %v162_v25 = vld [vmem:[#allocation2 + $0x38] sm:$0xff] }
  0x18   :  { %372 = vmatprep.subr.bf16.mxu0 %v484_v2  ;;  %v379_v16 = vpack.c.bf16 %v79_v15, %v78_v14  ;;  %v80_v17 = vld [vmem:[#allocation2 + $0x80] sm:$0xff]  ;;  %v81_v18 = vld [vmem:[#allocation2 + $0x90] sm:$0xff]  ;;  %366 = vmatprep.mubr.msk.f32.mxu1 %vm486_vm0, %v487_v19  ;;  %v397_v28 = vpack.c.bf16 %v162_v25, %v161_v22  ;;  %v163_v29 = vld [vmem:[#allocation2 + $0x48] sm:$0xff] }
  0x19   :  { %v382_v23 = vpack.c.bf16 %v81_v18, %v80_v17  ;;  %v82_v26 = vld [vmem:[#allocation2 + $0xa0] sm:$0xff]  ;;  %v83_v27 = vld [vmem:[#allocation2 + $0xb0] sm:$0xff]  ;;  %395 = vmatpush3.bf16.msra.mxu1 %v394_v24  ;;  %v164_v30 = vld [vmem:[#allocation2 + $0x58] sm:$0xff] }
  0x1a   :  { %428 = vset.pattern.permute.xlu0 %v485_v12  ;;  %396 = vmatprep.subr.bf16.mxu1 %v484_v2  ;;  %v385_v31 = vpack.c.bf16 %v83_v27, %v82_v26  ;;  %v84_v32 = vld [vmem:[#allocation2 + $0xc0] sm:$0xff]  ;;  %v85_v33 = vld [vmem:[#allocation2 + $0xd0] sm:$0xff]  ;;  %v400_v34 = vpack.c.bf16 %v164_v30, %v163_v29  ;;  %v165_v35 = vld [vmem:[#allocation2 + $0x68] sm:$0xff] }
  0x1b   :  { %51 = vperm.xlu0 %428, %v29_v3   ;;  %374 = vmatpush3.bf16.msra.mxu0 %v373_v9  ;;  %v166_v36 = vld [vmem:[#allocation2 + $0x78] sm:$0xff]  ;;  %v388_v37 = vpack.c.bf16 %v85_v33, %v84_v32  ;;  %v86_v38 = vld [vmem:[#allocation2 + $0xe0] sm:$0xff]  ;;  %v87_v39 = vld [vmem:[#allocation2 + $0xf0] sm:$0xff] }
  0x1c   :  { %375 = vmatprep.subr.bf16.mxu0 %v484_v2  ;;  %v403_v40 = vpack.c.bf16 %v166_v36, %v165_v35  ;;  %v167_v41 = vld [vmem:[#allocation2 + $0x88] sm:$0xff]  ;;  %v168_v42 = vld [vmem:[#allocation2 + $0x98] sm:$0xff]  ;;  %v391_v43 = vpack.c.bf16 %v87_v39, %v86_v38  ;;  %v261_v51 = vld [vmem:[%s565_s1] ss:$0 sm:$0xff] }
  0x1d   :  { %398 = vmatpush3.bf16.msra.mxu1 %v397_v28  ;;  %v406_v44 = vpack.c.bf16 %v168_v42, %v167_v41  ;;  %v169_v45 = vld [vmem:[#allocation2 + $0xa8] sm:$0xff]  ;;  %v170_v46 = vld [vmem:[#allocation2 + $0xb8] sm:$0xff]  ;;  %v262_v54 = vld [vmem:[%s565_s1 + $0x3] ss:$0 sm:$0xff] }
  0x1e   :  { %399 = vmatprep.subr.bf16.mxu1 %v484_v2  ;;  %v409_v47 = vpack.c.bf16 %v170_v46, %v169_v45  ;;  %v171_v48 = vld [vmem:[#allocation2 + $0xc8] sm:$0xff]  ;;  %v172_v49 = vld [vmem:[#allocation2 + $0xd8] sm:$0xff]  ;;  %v263_v55 = vld [vmem:[%s565_s1 + $0x1] ss:$0 sm:$0xff] }
  0x1f   :  { %430 = vset.pattern.permute.xlu0 %v483_v1  ;;  %377 = vmatpush3.bf16.msra.mxu0 %v376_v13  ;;  %v412_v50 = vpack.c.bf16 %v172_v49, %v171_v48  ;;  %v264_v56 = vld [vmem:[%s565_s1 + $0x2] ss:$0 sm:$0xff]  ;;  %v173_v1 = vld [vmem:[#allocation2 + $0xe8] sm:$0xff]  ;;  %v31_v4 = vld [vmem:[#allocation2 + $0x100] ss:$0 sm:$0xff]  ;;  %s488_s1 = smov [#allocation5]  }
  0x20   :  { %378 = vmatprep.subr.bf16.mxu0 %v484_v2  ;;  %v32_v9 = vld [vmem:[#allocation2 + $0x108] ss:$0 sm:$0xff]  ;;  %s252_s7 = sshll.u32 %s488_s1, 4  ;;  %s253_s7 = int_to_ptr.vmem [resolvable:$true] %s252_s7 }
  0x21   :  { %401 = vmatpush3.bf16.msra.mxu1 %v400_v34  ;;  %s453_s8 = scalar_lea.vmem %s253_s7, 128  ;;  %p458_p9 = scmp.lt.s32.totalorder %s253_s7, %s253_s7 }
  0x22   :  { %402 = vmatprep.subr.bf16.mxu1 %v484_v2  ;;  %p454_p8 = scmp.ne.s32.totalorder %s253_s7, %s453_s8  ;;  %p459_p10 = scmp.lt.s32.totalorder %s453_s8, %s453_s8 }
  0x23   :  { %380 = vmatpush3.bf16.msra.mxu0 %v379_v16 }
  0x24   :  { %381 = vmatprep.subr.bf16.mxu0 %v484_v2  ;;  %p460_p11 = por %p459_p10, %p458_p9 }
  0x25   :  { %404 = vmatpush3.bf16.msra.mxu1 %v403_v40 }
  0x26   :  { %405 = vmatprep.subr.bf16.mxu1 %v484_v2  ;;  %p461_p12 = pnand %p460_p11, %p454_p8 }
  0x27   :  { %383 = vmatpush3.bf16.msra.mxu0 %v382_v23 }
  0x28   :  { %384 = vmatprep.subr.bf16.mxu0 %v484_v2 }
  0x29   :  { %407 = vmatpush3.bf16.msra.mxu1 %v406_v44 }
  0x2a   :  { %408 = vmatprep.subr.bf16.mxu1 %v484_v2 }
  0x2b   :  { %386 = vmatpush3.bf16.msra.mxu0 %v385_v31 }
  0x2c   :  { %387 = vmatprep.subr.bf16.mxu0 %v484_v2 }
  0x2d   :  { %410 = vmatpush3.bf16.msra.mxu1 %v409_v47 }
  0x2e   :  { %411 = vmatprep.subr.bf16.mxu1 %v484_v2 }
  0x2f   :  { %389 = vmatpush3.bf16.msra.mxu0 %v388_v37 }
  0x30   :  { %390 = vmatprep.subr.bf16.mxu0 %v484_v2 }
  0x31   :  { %413 = vmatpush3.bf16.msra.mxu1 %v412_v50 }
  0x32   :  { %414 = vmatprep.subr.bf16.mxu1 %v484_v2  ;;  %v174_v2 = vld [vmem:[#allocation2 + $0xf8] sm:$0xff] }
  0x33   :  { %392 = vmatpush3.bf16.msra.mxu0 %v391_v43  ;;  %v415_v3 = vpack.c.bf16 %v174_v2, %v173_v1 }
  0x35   :  { %416 = vmatpush3.bf16.msra.mxu1 %v415_v3 }
  0x95   :  { %v37_v52 = vpop.permute.xlu0 %36  ;;  %v63_v57 = vpop.permute.xlu1 %62 }
  0x96   :  { %v43_v53 = vmul.f32 %v261_v51, %v37_v52  ;;  %v69_v61 = vmul.f32 %v264_v56, %v63_v57 }
  0x98   :  { %v48_v59 = vadd.f32 %v262_v54, %v43_v53 }
  0x9a   :  { %v52_v58 = vpop.permute.xlu0 %51 }
  0x9b   :  { %v58_v60 = vmul.f32 %v263_v55, %v52_v58 }
  0x9d   :  { %v59_v62 = vadd.f32 %v58_v60, %v48_v59 }
  0x9f   :  { %v70_v63 = vadd.f32 %v69_v61, %v59_v62 }
  0xa1   :  { %v71_v0 = vmax.f32 %v70_v63, 0.0 }
  0xa3   :  { %332 = vmatmul.mubr.f32.vlgmr.msra.gmra.mrb[0].mxu0 %v71_v0 }
 0x176   :  { %v154_v5 = vpop.f32.mrb[0].mxu0 }
 0x177   :  { %v155_v6 = vadd.f32 %v154_v5, %v31_v4  ;;  %v333_v7 = vpop.f32.mrb[1].mxu0 }
 0x179   :  { %v158_v8 = vmax.f32 %v155_v6, 0.0 }
 0x17b   :  { %367 = vmatmul.mubr.f32.vlgmr.msra.gmra.mrb[0].mxu1 %v158_v8 }
 0x24e   :  { %v241_v10 = vpop.f32.mrb[0].mxu1 }
 0x24f   :  { %v242_v11 = vadd.f32 %v241_v10, %v32_v9  ;;  %v368_v12 = vpop.f32.mrb[1].mxu1 }
 0x251   :  { %245 = vst [vmem:[#allocation5] sm:$0xff] %v242_v11 }
 0x252   :  { %464 = shalt.err (!%p461_p12)
}
 0x253   :  { %s465_s11 = scalar_lea.hbm %s567_s3, 128 }
 0x254   :  { %p466_p13 = scmp.ne.s32.totalorder %s567_s3, %s465_s11  ;;  %p469_p0 = scmp.lt.u32.totalorder %s465_s11, %s567_s3 }
 0x256   :  { %p471_p1 = pnand %p469_p0, %p466_p13 }
 0x258   :  { %474 = shalt.err (!%p471_p1)
}
 0x259   :  { %255 = dma.vmem_to_hbm [thread:$0]  %s253_s7, 128, %s567_s3, [#allocation4]  }
 0x25a   :  { %477 = dma.done.wait [#allocation4], 128  }
 0x25b   :  { %478 = vsyncadd [#allocation4], 4294967168 }
 0x25c   :  { %259 = vsyncpa [#allocation3], 1 }
 0x25d   :  { %260 = vsyncpa [#allocation4], 1 }

</bundles_post_ra>
